<compile_context>
chip_gen: v7x
topology: tpu7x:2x2x1
jax: 0.10.0
libtpu: 0.0.40
codegen_flags: <defaults>
</compile_context>

<pallas_src>
import numpy as np
import jax
import jax.numpy as jnp
from jax import lax
from jax.experimental import pallas as pl
from jax.experimental.pallas import tpu as pltpu

B = 2
C_IN = 4         # outer_channel == input_channel
C_INNER = 8      # inner_channel
H = W = 16
H2 = W2 = 8      # spatial after the stride-2 4x4 conv
ROWS = B * 2 * C_IN          # 16 output rows: per sample [x rows (4), y rows (4)]
NEG_SLOPE = 0.2  # LeakyReLU slope
EPS = 1e-5       # InstanceNorm2d eps


def _bilinear_matrix(out_size, in_size):
    """1-D interp matrix for Upsample(scale_factor=2, mode='bilinear', align_corners=True)."""
    A = np.zeros((out_size, in_size), np.float32)
    for i in range(out_size):
        src = i * (in_size - 1) / (out_size - 1)
        i0 = min(max(int(np.floor(src)), 0), in_size - 1)
        i1 = min(i0 + 1, in_size - 1)
        frac = src - i0
        A[i, i0] += 1.0 - frac
        A[i, i1] += frac
    return A


def _folded_upconv_mats():
    """MkT[k] = (S_k @ kron(A, A))^T, shape (9, H2*W2, H*W).

    S_k is the zero-padded spatial shift operator of tap k=(kh,kw) of the 3x3/p1 conv.
    Folding it into the upsample operator keeps only dense (H*W, H2*W2) blocks; the
    >95%-zero (H*W, H*W) shift matrices are never materialized.
    """
    M = np.kron(_bilinear_matrix(H, H2), _bilinear_matrix(W, W2))   # (256, 64)
    MkT = np.zeros((9, H2 * W2, H * W), np.float32)
    for kh in range(3):
        for kw in range(3):
            k = kh * 3 + kw
            Mk = np.zeros((H * W, H2 * W2), np.float32)
            for y in range(H):
                p = y + kh - 1
                if not (0 <= p < H):
                    continue
                for x in range(W):
                    q = x + kw - 1
                    if 0 <= q < W:
                        Mk[y * W + x, :] = M[p * W + q, :]
            MkT[k] = Mk.T
    return MkT


def unet_block_kernel(x_ref, p_ref, w1_ref, b1_ref, w2_ref, mk_ref, o_ref):
    # Channel-major layout; both samples stacked along the sublane (row) axis.
    p = p_ref[...]                                          # (B*C_IN*16, H2*W2) = (128, 64)
    p = jnp.where(p >= 0, p, NEG_SLOPE * p)                 # LeakyReLU(0.2) (leaky(0)==0 -> pad-safe)
    # down conv 4x4/s2 for both samples as one matmul (block-diagonal per-sample weight)
    h = jnp.dot(w1_ref[...], p, preferred_element_type=jnp.float32) + b1_ref[...]  # (B*C_INNER, 64)
    h = jnp.maximum(h, 0.0)                                 # ReLU
    # Upsample(bilinear, align_corners=True) + Conv3x3/p1, folded:
    #   y = sum_k (W2_k^T @ h) @ MkT[k]
    # First stage: single stacked matmul over all 9 taps; rows already in final output order
    # (x rows are zero weight rows -> stay zero through the whole up path).
    v = jnp.dot(w2_ref[...], h, preferred_element_type=jnp.float32)   # (9*ROWS, 64) = (144, 64)
    acc = jnp.zeros((ROWS, H * W), jnp.float32)             # (16, 256) lane-dense accumulator
    for k in range(9):
        acc = acc + jnp.dot(v[k * ROWS:(k + 1) * ROWS],
                            mk_ref[k].astype(jnp.float32),
                            preferred_element_type=jnp.float32)        # (16, 256)
    # InstanceNorm2d(outer_channel): per row over 256 spatial lanes, biased var, single pass.
    # Zero (skip) rows stay exactly zero: (0 - 0) * rsqrt(0 + eps) == 0.
    mean = jnp.mean(acc, axis=1, keepdims=True)
    msq = jnp.mean(acc * acc, axis=1, keepdims=True)
    var = jnp.maximum(msq - mean * mean, 0.0)
    y = (acc - mean) * lax.rsqrt(var + EPS)                 # (16, 256)
    # fused skip concat: x was pre-placed in the pass-through rows (zeros in y rows), so a single
    # add + one unmasked full-tile (16, 256) store finishes the kernel.
    o_ref[...] = y + x_ref[...]


def prepare_params(w1, b1, w2):
    """One-time host-side weight preprocessing (hoisted out of the per-call jit)."""
    w1 = np.asarray(w1, np.float32)
    b1 = np.asarray(b1, np.float32)
    w2 = np.asarray(w2, np.float32)

    w1t = w1.reshape(C_INNER, C_IN * 16)                     # (co, ci*16 + kh*4 + kw)
    w2kt = np.transpose(w2, (2, 3, 0, 1)).reshape(9, C_IN, C_INNER)   # [k=(kh,kw), co, ci]

    # block-diagonal per-sample weights -> batch runs as extra sublane rows of one matmul
    w1bd = np.zeros((B * C_INNER, B * C_IN * 16), np.float32)
    # stacked-over-taps second-stage weight; y rows sit at (b*2*C_IN + C_IN + co) so the
    # accumulator comes out already in the final output row order (x rows stay zero).
    w2s = np.zeros((9 * ROWS, B * C_INNER), np.float32)
    for b in range(B):
        w1bd[b * C_INNER:(b + 1) * C_INNER,
             b * C_IN * 16:(b + 1) * C_IN * 16] = w1t
        for k in range(9):
            r0 = k * ROWS + b * 2 * C_IN + C_IN
            w2s[r0:r0 + C_IN, b * C_INNER:(b + 1) * C_INNER] = w2kt[k]
    b1b = np.tile(b1, B).reshape(B * C_INNER, 1)

    mkT = _folded_upconv_mats()                              # (9, 64, 256)
    return (jnp.asarray(w1bd), jnp.asarray(b1b), jnp.asarray(w2s),
            jnp.asarray(mkT).astype(jnp.bfloat16))           # bf16: halves the dominant DMA


@jax.jit
def unet_skip_block(x_nchw, w1bd, b1b, w2s, mkT):
    # ---- layout-only glue (per call): im2col for the 4x4/s2 conv; skip-row placement ----
    xpad = jnp.pad(x_nchw, ((0, 0), (0, 0), (1, 1), (1, 1)))
    cols = [xpad[:, :, kh:kh + H:2, kw:kw + W:2] for kh in range(4) for kw in range(4)]
    p = jnp.stack(cols, axis=2)                              # (B, C_IN, 16, H2, W2), axis2 = kh*4+kw
    p = p.reshape(B * C_IN * 16, H2 * W2)                    # row = b*64 + ci*16 + kh*4 + kw

    # place x into the pass-through rows of the output layout (rows b*8 + c), zeros in y rows
    x16 = jnp.pad(x_nchw.reshape(B, C_IN, H * W),
                  ((0, 0), (0, C_IN), (0, 0))).reshape(ROWS, H * W)

    flops = (2 * (B * C_INNER) * (B * C_IN * 16) * (H2 * W2)
             + 2 * (9 * ROWS) * (B * C_INNER) * (H2 * W2)
             + 9 * 2 * ROWS * (H2 * W2) * (H * W))
    bytes_accessed = (4 * (x16.size + p.size + w1bd.size + b1b.size + w2s.size + ROWS * H * W)
                      + 2 * mkT.size)

    out = pl.pallas_call(
        unet_block_kernel,
        out_shape=jax.ShapeDtypeStruct((ROWS, H * W), jnp.float32),
        cost_estimate=pl.CostEstimate(flops=int(flops), transcendentals=0,
                                      bytes_accessed=int(bytes_accessed)),
    )(x16, p, w1bd, b1b, w2s, mkT)

    # output rows are already [x_b(4), y_b(4)] per sample -> pure contiguous reshape to NCHW
    return out.reshape(B, 2 * C_IN, H, W)


def reference_forward(x_nchw, w1, b1, w2, b2):
    """Independent pure-JAX reference (lax.conv + align_corners bilinear + instance norm)."""
    A = jnp.asarray(_bilinear_matrix(H, H2))
    h = jnp.where(x_nchw >= 0, x_nchw, NEG_SLOPE * x_nchw)
    h = lax.conv_general_dilated(h, w1, (2, 2), ((1, 1), (1, 1)),
                                 dimension_numbers=('NCHW', 'OIHW', 'NCHW'),
                                 precision=lax.Precision.HIGHEST)
    h = h + b1[None, :, None, None]
    h = jnp.maximum(h, 0.0)
    u = jnp.einsum('ip,jq,bcpq->bcij', A, A, h, precision=lax.Precision.HIGHEST)
    y = lax.conv_general_dilated(u, w2, (1, 1), ((1, 1), (1, 1)),
                                 dimension_numbers=('NCHW', 'OIHW', 'NCHW'),
                                 precision=lax.Precision.HIGHEST)
    y = y + b2[None, :, None, None]
    mean = y.mean(axis=(2, 3), keepdims=True)
    var = ((y - mean) ** 2).mean(axis=(2, 3), keepdims=True)
    y = (y - mean) * lax.rsqrt(var + EPS)
    return jnp.concatenate([x_nchw, y], axis=1)


if __name__ == "__main__":
    key = jax.random.PRNGKey(0)
    kx, k1, k2, k3, k4 = jax.random.split(key, 5)
    x = jax.random.normal(kx, (B, C_IN, H, W), jnp.float32)
    # deterministic synthetic parameters (shapes from the nn.Module __init__)
    w1 = 0.1 * jax.random.normal(k1, (C_INNER, C_IN, 4, 4), jnp.float32)   # down_conv weight
    b1 = 0.1 * jax.random.normal(k2, (C_INNER,), jnp.float32)              # down_conv bias
    w2 = 0.1 * jax.random.normal(k3, (C_IN, C_INNER, 3, 3), jnp.float32)   # up_conv weight
    b2 = 0.1 * jax.random.normal(k4, (C_IN,), jnp.float32)                 # up_conv bias (cancelled
                                                                           # exactly by InstanceNorm;
                                                                           # only used by the reference)

    params = prepare_params(w1, b1, w2)   # hoisted one-time weight preprocessing
    out = jax.block_until_ready(unet_skip_block(x, *params))
    assert out.shape == (B, 2 * C_IN, H, W), out.shape

    ref = jax.block_until_ready(reference_forward(x, w1, b1, w2, b2))
    np.testing.assert_allclose(np.asarray(out), np.asarray(ref), rtol=2e-2, atol=2e-2)

    print("KERNEL_OK")
</pallas_src>

<mosaic_0001>
module attributes {stable_mosaic.version = 11 : i64} {
  func.func @unet_block_kernel(%arg0: memref<16x256xf32, #tpu.memory_space<vmem>>, %arg1: memref<128x64xf32, #tpu.memory_space<vmem>>, %arg2: memref<16x128xf32, #tpu.memory_space<vmem>>, %arg3: memref<16x1xf32, #tpu.memory_space<vmem>>, %arg4: memref<144x16xf32, #tpu.memory_space<vmem>>, %arg5: memref<9x64x256xbf16, #tpu.memory_space<vmem>>, %arg6: memref<16x256xf32, #tpu.memory_space<vmem>>) attributes {dimension_semantics = [], scalar_prefetch = 0 : i64, scratch_operands = 0 : i64, tpu.core_type = #tpu.core_type<tc>} {
    %c0 = arith.constant 0 : index
    %c0_0 = arith.constant 0 : index
    %0 = vector.load %arg1[%c0, %c0_0] : memref<128x64xf32, #tpu.memory_space<vmem>>, vector<128x64xf32>
    %cst = arith.constant 0.000000e+00 : f32
    %1 = vector.broadcast %cst : f32 to vector<128x64xf32>
    %2 = arith.cmpf oge, %0, %1 : vector<128x64xf32>
    %cst_1 = arith.constant 2.000000e-01 : f32
    %3 = vector.broadcast %cst_1 : f32 to vector<128x64xf32>
    %4 = arith.mulf %3, %0 : vector<128x64xf32>
    %5 = arith.select %2, %0, %4 : vector<128x64xi1>, vector<128x64xf32>
    %c0_2 = arith.constant 0 : index
    %c0_3 = arith.constant 0 : index
    %6 = vector.load %arg2[%c0_2, %c0_3] : memref<16x128xf32, #tpu.memory_space<vmem>>, vector<16x128xf32>
    %cst_4 = arith.constant dense<0.000000e+00> : vector<16x64xf32>
    %7 = tpu.matmul %6, %5, %cst_4 {dimension_numbers = #tpu.dot_dimension_numbers<[1], [0], [0], [1], [0, 0, 1, 1], [], []>} : vector<16x128xf32>, vector<128x64xf32>, vector<16x64xf32> -> vector<16x64xf32>
    %c0_5 = arith.constant 0 : index
    %c0_6 = arith.constant 0 : index
    %8 = vector.load %arg3[%c0_5, %c0_6] : memref<16x1xf32, #tpu.memory_space<vmem>>, vector<16x1xf32>
    %9 = vector.broadcast %8 : vector<16x1xf32> to vector<16x64xf32>
    %10 = arith.addf %7, %9 : vector<16x64xf32>
    %cst_7 = arith.constant 0.000000e+00 : f32
    %11 = vector.broadcast %cst_7 : f32 to vector<16x64xf32>
    %12 = arith.maximumf %10, %11 : vector<16x64xf32>
    %c0_8 = arith.constant 0 : index
    %c0_9 = arith.constant 0 : index
    %13 = vector.load %arg4[%c0_8, %c0_9] : memref<144x16xf32, #tpu.memory_space<vmem>>, vector<144x16xf32>
    %cst_10 = arith.constant dense<0.000000e+00> : vector<144x64xf32>
    %14 = tpu.matmul %13, %12, %cst_10 {dimension_numbers = #tpu.dot_dimension_numbers<[1], [0], [0], [1], [0, 0, 1, 1], [], []>} : vector<144x16xf32>, vector<16x64xf32>, vector<144x64xf32> -> vector<144x64xf32>
    %cst_11 = arith.constant 0.000000e+00 : f32
    %15 = vector.broadcast %cst_11 : f32 to vector<16x256xf32>
    %16 = vector.extract_strided_slice %14 {offsets = [0, 0], sizes = [16, 64], strides = [1, 1]} : vector<144x64xf32> to vector<16x64xf32>
    %c0_12 = arith.constant 0 : index
    %c0_13 = arith.constant 0 : index
    %c0_14 = arith.constant 0 : index
    %17 = vector.load %arg5[%c0_12, %c0_13, %c0_14] : memref<9x64x256xbf16, #tpu.memory_space<vmem>>, vector<1x64x256xbf16>
    %18 = vector.shape_cast %17 : vector<1x64x256xbf16> to vector<64x256xbf16>
    %19 = arith.extf %18 : vector<64x256xbf16> to vector<64x256xf32>
    %cst_15 = arith.constant dense<0.000000e+00> : vector<16x256xf32>
    %20 = tpu.matmul %16, %19, %cst_15 {dimension_numbers = #tpu.dot_dimension_numbers<[1], [0], [0], [1], [0, 0, 1, 1], [], []>} : vector<16x64xf32>, vector<64x256xf32>, vector<16x256xf32> -> vector<16x256xf32>
    %21 = arith.addf %15, %20 : vector<16x256xf32>
    %22 = vector.extract_strided_slice %14 {offsets = [16, 0], sizes = [16, 64], strides = [1, 1]} : vector<144x64xf32> to vector<16x64xf32>
    %c1 = arith.constant 1 : index
    %c0_16 = arith.constant 0 : index
    %c0_17 = arith.constant 0 : index
    %23 = vector.load %arg5[%c1, %c0_16, %c0_17] : memref<9x64x256xbf16, #tpu.memory_space<vmem>>, vector<1x64x256xbf16>
    %24 = vector.shape_cast %23 : vector<1x64x256xbf16> to vector<64x256xbf16>
    %25 = arith.extf %24 : vector<64x256xbf16> to vector<64x256xf32>
    %cst_18 = arith.constant dense<0.000000e+00> : vector<16x256xf32>
    %26 = tpu.matmul %22, %25, %cst_18 {dimension_numbers = #tpu.dot_dimension_numbers<[1], [0], [0], [1], [0, 0, 1, 1], [], []>} : vector<16x64xf32>, vector<64x256xf32>, vector<16x256xf32> -> vector<16x256xf32>
    %27 = arith.addf %21, %26 : vector<16x256xf32>
    %28 = vector.extract_strided_slice %14 {offsets = [32, 0], sizes = [16, 64], strides = [1, 1]} : vector<144x64xf32> to vector<16x64xf32>
    %c2 = arith.constant 2 : index
    %c0_19 = arith.constant 0 : index
    %c0_20 = arith.constant 0 : index
    %29 = vector.load %arg5[%c2, %c0_19, %c0_20] : memref<9x64x256xbf16, #tpu.memory_space<vmem>>, vector<1x64x256xbf16>
    %30 = vector.shape_cast %29 : vector<1x64x256xbf16> to vector<64x256xbf16>
    %31 = arith.extf %30 : vector<64x256xbf16> to vector<64x256xf32>
    %cst_21 = arith.constant dense<0.000000e+00> : vector<16x256xf32>
    %32 = tpu.matmul %28, %31, %cst_21 {dimension_numbers = #tpu.dot_dimension_numbers<[1], [0], [0], [1], [0, 0, 1, 1], [], []>} : vector<16x64xf32>, vector<64x256xf32>, vector<16x256xf32> -> vector<16x256xf32>
    %33 = arith.addf %27, %32 : vector<16x256xf32>
    %34 = vector.extract_strided_slice %14 {offsets = [48, 0], sizes = [16, 64], strides = [1, 1]} : vector<144x64xf32> to vector<16x64xf32>
    %c3 = arith.constant 3 : index
    %c0_22 = arith.constant 0 : index
    %c0_23 = arith.constant 0 : index
    %35 = vector.load %arg5[%c3, %c0_22, %c0_23] : memref<9x64x256xbf16, #tpu.memory_space<vmem>>, vector<1x64x256xbf16>
    %36 = vector.shape_cast %35 : vector<1x64x256xbf16> to vector<64x256xbf16>
    %37 = arith.extf %36 : vector<64x256xbf16> to vector<64x256xf32>
    %cst_24 = arith.constant dense<0.000000e+00> : vector<16x256xf32>
    %38 = tpu.matmul %34, %37, %cst_24 {dimension_numbers = #tpu.dot_dimension_numbers<[1], [0], [0], [1], [0, 0, 1, 1], [], []>} : vector<16x64xf32>, vector<64x256xf32>, vector<16x256xf32> -> vector<16x256xf32>
    %39 = arith.addf %33, %38 : vector<16x256xf32>
    %40 = vector.extract_strided_slice %14 {offsets = [64, 0], sizes = [16, 64], strides = [1, 1]} : vector<144x64xf32> to vector<16x64xf32>
    %c4 = arith.constant 4 : index
    %c0_25 = arith.constant 0 : index
    %c0_26 = arith.constant 0 : index
    %41 = vector.load %arg5[%c4, %c0_25, %c0_26] : memref<9x64x256xbf16, #tpu.memory_space<vmem>>, vector<1x64x256xbf16>
    %42 = vector.shape_cast %41 : vector<1x64x256xbf16> to vector<64x256xbf16>
    %43 = arith.extf %42 : vector<64x256xbf16> to vector<64x256xf32>
    %cst_27 = arith.constant dense<0.000000e+00> : vector<16x256xf32>
    %44 = tpu.matmul %40, %43, %cst_27 {dimension_numbers = #tpu.dot_dimension_numbers<[1], [0], [0], [1], [0, 0, 1, 1], [], []>} : vector<16x64xf32>, vector<64x256xf32>, vector<16x256xf32> -> vector<16x256xf32>
    %45 = arith.addf %39, %44 : vector<16x256xf32>
    %46 = vector.extract_strided_slice %14 {offsets = [80, 0], sizes = [16, 64], strides = [1, 1]} : vector<144x64xf32> to vector<16x64xf32>
    %c5 = arith.constant 5 : index
    %c0_28 = arith.constant 0 : index
    %c0_29 = arith.constant 0 : index
    %47 = vector.load %arg5[%c5, %c0_28, %c0_29] : memref<9x64x256xbf16, #tpu.memory_space<vmem>>, vector<1x64x256xbf16>
    %48 = vector.shape_cast %47 : vector<1x64x256xbf16> to vector<64x256xbf16>
    %49 = arith.extf %48 : vector<64x256xbf16> to vector<64x256xf32>
    %cst_30 = arith.constant dense<0.000000e+00> : vector<16x256xf32>
    %50 = tpu.matmul %46, %49, %cst_30 {dimension_numbers = #tpu.dot_dimension_numbers<[1], [0], [0], [1], [0, 0, 1, 1], [], []>} : vector<16x64xf32>, vector<64x256xf32>, vector<16x256xf32> -> vector<16x256xf32>
    %51 = arith.addf %45, %50 : vector<16x256xf32>
    %52 = vector.extract_strided_slice %14 {offsets = [96, 0], sizes = [16, 64], strides = [1, 1]} : vector<144x64xf32> to vector<16x64xf32>
    %c6 = arith.constant 6 : index
    %c0_31 = arith.constant 0 : index
    %c0_32 = arith.constant 0 : index
    %53 = vector.load %arg5[%c6, %c0_31, %c0_32] : memref<9x64x256xbf16, #tpu.memory_space<vmem>>, vector<1x64x256xbf16>
    %54 = vector.shape_cast %53 : vector<1x64x256xbf16> to vector<64x256xbf16>
    %55 = arith.extf %54 : vector<64x256xbf16> to vector<64x256xf32>
    %cst_33 = arith.constant dense<0.000000e+00> : vector<16x256xf32>
    %56 = tpu.matmul %52, %55, %cst_33 {dimension_numbers = #tpu.dot_dimension_numbers<[1], [0], [0], [1], [0, 0, 1, 1], [], []>} : vector<16x64xf32>, vector<64x256xf32>, vector<16x256xf32> -> vector<16x256xf32>
    %57 = arith.addf %51, %56 : vector<16x256xf32>
    %58 = vector.extract_strided_slice %14 {offsets = [112, 0], sizes = [16, 64], strides = [1, 1]} : vector<144x64xf32> to vector<16x64xf32>
    %c7 = arith.constant 7 : index
    %c0_34 = arith.constant 0 : index
    %c0_35 = arith.constant 0 : index
    %59 = vector.load %arg5[%c7, %c0_34, %c0_35] : memref<9x64x256xbf16, #tpu.memory_space<vmem>>, vector<1x64x256xbf16>
    %60 = vector.shape_cast %59 : vector<1x64x256xbf16> to vector<64x256xbf16>
    %61 = arith.extf %60 : vector<64x256xbf16> to vector<64x256xf32>
    %cst_36 = arith.constant dense<0.000000e+00> : vector<16x256xf32>
    %62 = tpu.matmul %58, %61, %cst_36 {dimension_numbers = #tpu.dot_dimension_numbers<[1], [0], [0], [1], [0, 0, 1, 1], [], []>} : vector<16x64xf32>, vector<64x256xf32>, vector<16x256xf32> -> vector<16x256xf32>
    %63 = arith.addf %57, %62 : vector<16x256xf32>
    %64 = vector.extract_strided_slice %14 {offsets = [128, 0], sizes = [16, 64], strides = [1, 1]} : vector<144x64xf32> to vector<16x64xf32>
    %c8 = arith.constant 8 : index
    %c0_37 = arith.constant 0 : index
    %c0_38 = arith.constant 0 : index
    %65 = vector.load %arg5[%c8, %c0_37, %c0_38] : memref<9x64x256xbf16, #tpu.memory_space<vmem>>, vector<1x64x256xbf16>
    %66 = vector.shape_cast %65 : vector<1x64x256xbf16> to vector<64x256xbf16>
    %67 = arith.extf %66 : vector<64x256xbf16> to vector<64x256xf32>
    %cst_39 = arith.constant dense<0.000000e+00> : vector<16x256xf32>
    %68 = tpu.matmul %64, %67, %cst_39 {dimension_numbers = #tpu.dot_dimension_numbers<[1], [0], [0], [1], [0, 0, 1, 1], [], []>} : vector<16x64xf32>, vector<64x256xf32>, vector<16x256xf32> -> vector<16x256xf32>
    %69 = arith.addf %63, %68 : vector<16x256xf32>
    %cst_40 = arith.constant dense<0.000000e+00> : vector<16xf32>
    %70 = vector.multi_reduction <add>, %69, %cst_40 [1] : vector<16x256xf32> to vector<16xf32>
    %71 = vector.shape_cast %70 : vector<16xf32> to vector<16x1xf32>
    %cst_41 = arith.constant 2.560000e+02 : f32
    %72 = vector.broadcast %cst_41 : f32 to vector<16x1xf32>
    %73 = arith.divf %71, %72 : vector<16x1xf32>
    %74 = arith.mulf %69, %69 : vector<16x256xf32>
    %cst_42 = arith.constant dense<0.000000e+00> : vector<16xf32>
    %75 = vector.multi_reduction <add>, %74, %cst_42 [1] : vector<16x256xf32> to vector<16xf32>
    %76 = vector.shape_cast %75 : vector<16xf32> to vector<16x1xf32>
    %cst_43 = arith.constant 2.560000e+02 : f32
    %77 = vector.broadcast %cst_43 : f32 to vector<16x1xf32>
    %78 = arith.divf %76, %77 : vector<16x1xf32>
    %79 = arith.mulf %73, %73 : vector<16x1xf32>
    %80 = arith.subf %78, %79 : vector<16x1xf32>
    %cst_44 = arith.constant 0.000000e+00 : f32
    %81 = vector.broadcast %cst_44 : f32 to vector<16x1xf32>
    %82 = arith.maximumf %80, %81 : vector<16x1xf32>
    %83 = vector.broadcast %73 : vector<16x1xf32> to vector<16x256xf32>
    %84 = arith.subf %69, %83 : vector<16x256xf32>
    %cst_45 = arith.constant 9.99999974E-6 : f32
    %85 = vector.broadcast %cst_45 : f32 to vector<16x1xf32>
    %86 = arith.addf %82, %85 : vector<16x1xf32>
    %87 = math.rsqrt %86 : vector<16x1xf32>
    %88 = vector.broadcast %87 : vector<16x1xf32> to vector<16x256xf32>
    %89 = arith.mulf %84, %88 : vector<16x256xf32>
    %c0_46 = arith.constant 0 : index
    %c0_47 = arith.constant 0 : index
    %90 = vector.load %arg0[%c0_46, %c0_47] : memref<16x256xf32, #tpu.memory_space<vmem>>, vector<16x256xf32>
    %91 = arith.addf %89, %90 : vector<16x256xf32>
    %c0_48 = arith.constant 0 : index
    %c0_49 = arith.constant 0 : index
    %92 = vector.load %arg6[%c0_48, %c0_49] : memref<16x256xf32, #tpu.memory_space<vmem>>, vector<16x256xf32>
    tpu.vector_store %arg6[%c0_48, %c0_49], %91 {strides = array<i32>} : memref<16x256xf32, #tpu.memory_space<vmem>>, vector<16x256xf32>,
    return
  }
}

</mosaic_0001>

<bundles_post_ra>
// kernel: unet_skip_block.1
= control target key start
LH: loop header
LB: loop body
LE: loop exit
PB: predicated region body
PF: predicated region fallthrough
CT: control target
= control target key end

     0   :  { %v2064_v3 = vmov 0   ;;  %s2536_s1 = inlined_call_operand.vmem [shape: f32[128,64], index: 1, kind: input, shape index: {}]   ;;  %s2537_s2 = inlined_call_operand.vmem [shape: f32[16,128], index: 2, kind: input, shape index: {}]   ;;  %s2538_s3 = inlined_call_operand.vmem [shape: f32[16,1], index: 3, kind: input, shape index: {}]   ;;  %s2539_s4 = inlined_call_operand.vmem [shape: f32[144,16], index: 4, kind: input, shape index: {}]   ;;  %s2540_s5 = inlined_call_operand.vmem [shape: bf16[9,64,256], index: 5, kind: input, shape index: {}]   ;;  %s2541_s0 = inlined_call_operand.vmem [shape: f32[16,256], index: 0, kind: input, shape index: {}]   ;;  %s2542_s6 = inlined_call_operand.vmem [shape: f32[16,256], index: 6, kind: output, shape index: {}]  }
   0x1   :  { %v23_v0 = vld [vmem:[%s2536_s1] sm:$0xff]  ;;  %v24_v1 = vld [vmem:[%s2536_s1 + $0x8] sm:$0xff]  ;;  %v25_v2 = vld [vmem:[%s2536_s1 + $0x10] sm:$0xff]  ;;  %1951 = vset.pattern.permute.xlu0 %v2064_v3 }
   0x2   :  { %vm39_vm0 = vcmp.ge.f32.partialorder %v23_v0, 0.0  ;;  %vm40_vm1 = vcmp.ge.f32.partialorder %v24_v1, 0.0  ;;  %v55_v4 = vmul.f32 0.2, %v23_v0  ;;  %v56_v5 = vmul.f32 0.2, %v24_v1 }
   0x3   :  { %v26_v6 = vld [vmem:[%s2536_s1 + $0x18] sm:$0xff]  ;;  %vm41_vm2 = vcmp.ge.f32.partialorder %v25_v2, 0.0  ;;  %v57_v7 = vmul.f32 0.2, %v25_v2  ;;  %v27_v8 = vld [vmem:[%s2536_s1 + $0x20] sm:$0xff]  ;;  %v28_v9 = vld [vmem:[%s2536_s1 + $0x28] sm:$0xff] }
   0x4   :  { %v71_v10 = vsel %vm39_vm0, %v23_v0, %v55_v4  ;;  %v72_v11 = vsel %vm40_vm1, %v24_v1, %v56_v5  ;;  %vm42_vm3 = vcmp.ge.f32.partialorder %v26_v6, 0.0  ;;  %v58_v12 = vmul.f32 0.2, %v26_v6  ;;  %v29_v13 = vld [vmem:[%s2536_s1 + $0x30] sm:$0xff]  ;;  %v30_v14 = vld [vmem:[%s2536_s1 + $0x38] sm:$0xff]  ;;  %v31_v20 = vld [vmem:[%s2536_s1 + $0x40] sm:$0xff] }
   0x5   :  { %v1665_v15 = vpack.c.bf16 %v72_v11, %v71_v10  ;;  %v73_v16 = vsel %vm41_vm2, %v25_v2, %v57_v7  ;;  %vm43_vm4 = vcmp.ge.f32.partialorder %v27_v8, 0.0  ;;  %vm44_vm5 = vcmp.ge.f32.partialorder %v28_v9, 0.0  ;;  %v32_v24 = vld [vmem:[%s2536_s1 + $0x48] sm:$0xff]  ;;  %v87_v27 = vld [vmem:[%s2537_s2] sm:$0xff]  ;;  %v33_v34 = vld [vmem:[%s2536_s1 + $0x50] sm:$0xff] }
   0x6   :  { %v74_v17 = vsel %vm42_vm3, %v26_v6, %v58_v12  ;;  %v59_v18 = vmul.f32 0.2, %v27_v8  ;;  %v60_v19 = vmul.f32 0.2, %v28_v9  ;;  %vm45_vm6 = vcmp.ge.f32.partialorder %v29_v13, 0.0  ;;  %1631 = vmatprep.mubr.f32.mxu0 %v87_v27  ;;  %v89_v29 = vld [vmem:[%s2538_s3] sm:$0xff] }
   0x7   :  { %1666 = vmatprep.subr.bf16.mxu0 %v1665_v15  ;;  %v1669_v21 = vpack.c.bf16 %v74_v17, %v73_v16  ;;  %vm46_vm7 = vcmp.ge.f32.partialorder %v30_v14, 0.0  ;;  %v61_v22 = vmul.f32 0.2, %v29_v13  ;;  %v62_v23 = vmul.f32 0.2, %v30_v14  ;;  %93 = vperm.xlu0 %1951, %v89_v29   ;;  %v34_v35 = vld [vmem:[%s2536_s1 + $0x58] sm:$0xff] }
   0x8   :  { %1668 = vmatpush3.bf16.msra.mxu0 %v1665_v15  ;;  %v75_v25 = vsel %vm43_vm4, %v27_v8, %v59_v18  ;;  %v76_v26 = vsel %vm44_vm5, %v28_v9, %v60_v19  ;;  %v63_v32 = vmul.f32 0.2, %v31_v20  ;;  %v64_v33 = vmul.f32 0.2, %v32_v24  ;;  %v90_v36 = vld [vmem:[%s2538_s3 + $0x8] sm:$0xff]  ;;  %v35_v42 = vld [vmem:[%s2536_s1 + $0x60] sm:$0xff] }
   0x9   :  { %1670 = vmatprep.subr.bf16.mxu0 %v1669_v21  ;;  %v1673_v28 = vpack.c.bf16 %v76_v26, %v75_v25  ;;  %v77_v30 = vsel %vm45_vm6, %v29_v13, %v61_v22  ;;  %v78_v31 = vsel %vm46_vm7, %v30_v14, %v62_v23  ;;  %vm47_vm8 = vcmp.ge.f32.partialorder %v31_v20, 0.0  ;;  %v36_v43 = vld [vmem:[%s2536_s1 + $0x68] sm:$0xff]  ;;  %v37_v49 = vld [vmem:[%s2536_s1 + $0x70] sm:$0xff]  ;;  %v38_v50 = vld [vmem:[%s2536_s1 + $0x78] sm:$0xff] }
   0xa   :  { %vm48_vm9 = vcmp.ge.f32.partialorder %v32_v24, 0.0  ;;  %v1677_v37 = vpack.c.bf16 %v78_v31, %v77_v30  ;;  %v79_v38 = vsel %vm47_vm8, %v31_v20, %v63_v32  ;;  %v65_v40 = vmul.f32 0.2, %v33_v34  ;;  %v88_v60 = vld [vmem:[%s2537_s2 + $0x8] sm:$0xff]  ;;  %v178_v61 = vld [vmem:[%s2539_s4] sm:$0xff]  ;;  %v180_v12 = vld [vmem:[%s2539_s4 + $0x10] sm:$0xff] }
   0xb   :  { %v80_v39 = vsel %vm48_vm9, %v32_v24, %v64_v33  ;;  %v66_v41 = vmul.f32 0.2, %v34_v35  ;;  %98 = vperm.xlu0 %1951, %v90_v36   ;;  %vm49_vm10 = vcmp.ge.f32.partialorder %v33_v34, 0.0  ;;  %vm50_vm11 = vcmp.ge.f32.partialorder %v34_v35, 0.0  ;;  %v1961_v62 = vld [vmem:[%s2540_s5 + $0xc4] ss:$8 sps:$4 sm:$0xff]  }
   0xc   :  { %1672 = vmatpush3.bf16.msra.mxu0 %v1669_v21  ;;  %v1681_v44 = vpack.c.bf16 %v80_v39, %v79_v38  ;;  %v81_v45 = vsel %vm49_vm10, %v33_v34, %v65_v40  ;;  %v67_v47 = vmul.f32 0.2, %v35_v42  ;;  %v68_v48 = vmul.f32 0.2, %v36_v43  ;;  %v1963_v63 = vld [vmem:[%s2540_s5 + $0xc0] ss:$8 sps:$4 sm:$0xff]   ;;  %1750 = vmatprep.subr.bf16.mxu1 %v1961_v62 }
   0xd   :  { %1674 = vmatprep.subr.bf16.mxu0 %v1673_v28  ;;  %v82_v46 = vsel %vm50_vm11, %v34_v35, %v66_v41  ;;  %vm51_vm12 = vcmp.ge.f32.partialorder %v35_v42, 0.0  ;;  %vm52_vm13 = vcmp.ge.f32.partialorder %v36_v43, 0.0  ;;  %v69_v54 = vmul.f32 0.2, %v37_v49  ;;  %1752 = vmatpush1.bf16.msra.mxu1 %v1963_v63  ;;  %v1952_v9 = vld [vmem:[%s2540_s5 + $0x44] ss:$8 sps:$4 sm:$0xff]  }
   0xe   :  { %v1685_v51 = vpack.c.bf16 %v82_v46, %v81_v45  ;;  %v83_v52 = vsel %vm51_vm12, %v35_v42, %v67_v47  ;;  %v84_v53 = vsel %vm52_vm13, %v36_v43, %v68_v48  ;;  %v70_v55 = vmul.f32 0.2, %v38_v50  ;;  %v179_v10 = vld [vmem:[%s2539_s4 + $0x8] sm:$0xff]  ;;  %v1955_v13 = vld [vmem:[%s2540_s5 + $0x54] ss:$8 sps:$4 sm:$0xff]   ;;  %v182_v16 = vld [vmem:[%s2539_s4 + $0x20] sm:$0xff] }
   0xf   :  { %vm53_vm14 = vcmp.ge.f32.partialorder %v37_v49, 0.0  ;;  %vm54_vm15 = vcmp.ge.f32.partialorder %v38_v50, 0.0  ;;  %v1689_v56 = vpack.c.bf16 %v84_v53, %v83_v52  ;;  %vm196_vm0 = vcmask 130048   ;;  %v1954_v11 = vld [vmem:[%s2540_s5 + $0x40] ss:$8 sps:$4 sm:$0xff]   ;;  %v181_v14 = vld [vmem:[%s2539_s4 + $0x18] sm:$0xff] }
  0x10   :  { %1676 = vmatpush3.bf16.msra.mxu0 %v1673_v28  ;;  %v85_v57 = vsel %vm53_vm14, %v37_v49, %v69_v54  ;;  %v86_v58 = vsel %vm54_vm15, %v38_v50, %v70_v55  ;;  %v1957_v15 = vld [vmem:[%s2540_s5 + $0x50] ss:$8 sps:$4 sm:$0xff]   ;;  %v1958_v17 = vld [vmem:[%s2540_s5 + $0x64] ss:$8 sps:$4 sm:$0xff]   ;;  %v1960_v19 = vld [vmem:[%s2540_s5 + $0x60] ss:$8 sps:$4 sm:$0xff]  }
  0x11   :  { %1678 = vmatprep.subr.bf16.mxu0 %v1677_v37  ;;  %v1693_v59 = vpack.c.bf16 %v86_v58, %v85_v57  ;;  %v183_v18 = vld [vmem:[%s2539_s4 + $0x28] sm:$0xff]  ;;  %v184_v20 = vld [vmem:[%s2539_s4 + $0x30] sm:$0xff]  ;;  %v185_v21 = vld [vmem:[%s2539_s4 + $0x38] sm:$0xff]  ;;  %v2065_v38 = vmov 0.0   ;;  %vm455_vm1 = vcmask 523264  }
  0x12   :  { %v186_v22 = vld [vmem:[%s2539_s4 + $0x40] sm:$0xff]  ;;  %v187_v23 = vld [vmem:[%s2539_s4 + $0x48] sm:$0xff]  ;;  %v188_v24 = vld [vmem:[%s2539_s4 + $0x50] sm:$0xff]  ;;  %829 = vmatprep.mubr.f32.mxu1 %v2065_v38 }
  0x13   :  { %v189_v25 = vld [vmem:[%s2539_s4 + $0x58] sm:$0xff]  ;;  %v190_v26 = vld [vmem:[%s2539_s4 + $0x60] sm:$0xff]  ;;  %v191_v27 = vld [vmem:[%s2539_s4 + $0x68] sm:$0xff] }
  0x14   :  { %1680 = vmatpush3.bf16.msra.mxu0 %v1677_v37  ;;  %v192_v28 = vld [vmem:[%s2539_s4 + $0x70] sm:$0xff]  ;;  %v193_v29 = vld [vmem:[%s2539_s4 + $0x78] sm:$0xff]  ;;  %v194_v30 = vld [vmem:[%s2539_s4 + $0x80] sm:$0xff] }
  0x15   :  { %1682 = vmatprep.subr.bf16.mxu0 %v1681_v44  ;;  %v195_v31 = vld [vmem:[%s2539_s4 + $0x88] sm:$0xff]  ;;  %v1964_v32 = vld [vmem:[%s2540_s5 + $0x74] ss:$8 sps:$4 sm:$0xff]   ;;  %v1966_v34 = vld [vmem:[%s2540_s5 + $0x70] ss:$8 sps:$4 sm:$0xff]  }
  0x16   :  { %v1967_v33 = vld [vmem:[%s2540_s5 + $0xd4] ss:$8 sps:$4 sm:$0xff]   ;;  %v1969_v35 = vld [vmem:[%s2540_s5 + $0xd0] ss:$8 sps:$4 sm:$0xff]   ;;  %v1970_v36 = vld [vmem:[%s2540_s5 + $0x4] ss:$8 sps:$4 sm:$0xff]  }
  0x17   :  { %1754 = vmatprep.subr.bf16.mxu1 %v1967_v33  ;;  %v1973_v37 = vld [vmem:[%s2540_s5 + $0xe4] ss:$8 sps:$4 sm:$0xff]   ;;  %v1975_v39 = vld [vmem:[%s2540_s5 + $0xe0] ss:$8 sps:$4 sm:$0xff]   ;;  %v1979_v40 = vld [vmem:[%s2540_s5 + $0xf4] ss:$8 sps:$4 sm:$0xff]  }
  0x18   :  { %1684 = vmatpush3.bf16.msra.mxu0 %v1681_v44  ;;  %1756 = vmatpush1.bf16.msra.mxu1 %v1969_v35  ;;  %v1981_v41 = vld [vmem:[%s2540_s5 + $0xf0] ss:$8 sps:$4 sm:$0xff]   ;;  %v1985_v42 = vld [vmem:[%s2540_s5 + $0x104] ss:$8 sps:$4 sm:$0xff]   ;;  %v1972_v45 = vld [vmem:[%s2540_s5] ss:$8 sps:$4 sm:$0xff]  }
  0x19   :  { %1686 = vmatprep.subr.bf16.mxu0 %v1685_v51  ;;  %1758 = vmatprep.subr.bf16.mxu1 %v1973_v37  ;;  %v1976_v47 = vld [vmem:[%s2540_s5 + $0x14] ss:$8 sps:$4 sm:$0xff]   ;;  %v1978_v49 = vld [vmem:[%s2540_s5 + $0x10] ss:$8 sps:$4 sm:$0xff]   ;;  %v1984_v53 = vld [vmem:[%s2540_s5 + $0x20] ss:$8 sps:$4 sm:$0xff]  }
  0x1a   :  { %v1987_v54 = vld [vmem:[%s2540_s5 + $0x100] ss:$8 sps:$4 sm:$0xff]   ;;  %v1991_v58 = vld [vmem:[%s2540_s5 + $0x114] ss:$8 sps:$4 sm:$0xff]   ;;  %v1997_v62 = vld [vmem:[%s2540_s5 + $0x124] ss:$8 sps:$4 sm:$0xff]  }
  0x1b   :  { %v2033_v33 = vld [vmem:[%s2540_s5 + $0x1b4] ss:$8 sps:$4 sm:$0xff]   ;;  %v2036_v35 = vld [vmem:[%s2540_s5 + $0x1c4] ss:$8 sps:$4 sm:$0xff]  }
  0x1c   :  { %1688 = vmatpush3.bf16.msra.mxu0 %v1685_v51  ;;  %1760 = vmatpush1.bf16.msra.mxu1 %v1975_v39  ;;  %v1982_v51 = vld [vmem:[%s2540_s5 + $0x24] ss:$8 sps:$4 sm:$0xff]   ;;  %v2039_v37 = vld [vmem:[%s2540_s5 + $0x1d4] ss:$8 sps:$4 sm:$0xff]   ;;  %v2041_v39 = vld [vmem:[%s2540_s5 + $0x1d0] ss:$8 sps:$4 sm:$0xff]  }
  0x1d   :  { %1690 = vmatprep.subr.bf16.mxu0 %v1689_v56  ;;  %1762 = vmatprep.subr.bf16.mxu1 %v1979_v40  ;;  %v2042_v40 = vld [vmem:[%s2540_s5 + $0x1e4] ss:$8 sps:$4 sm:$0xff]  }
  0x20   :  { %1692 = vmatpush3.bf16.msra.mxu0 %v1689_v56  ;;  %1764 = vmatpush1.bf16.msra.mxu1 %v1981_v41  ;;  %v1988_v56 = vld [vmem:[%s2540_s5 + $0x34] ss:$8 sps:$4 sm:$0xff]   ;;  %v2044_v41 = vld [vmem:[%s2540_s5 + $0x1e0] ss:$8 sps:$4 sm:$0xff]  }
  0x21   :  { %1694 = vmatprep.subr.bf16.mxu0 %v1693_v59  ;;  %1766 = vmatprep.subr.bf16.mxu1 %v1985_v42  ;;  %v2045_v42 = vld [vmem:[%s2540_s5 + $0x1f4] ss:$8 sps:$4 sm:$0xff]  }
  0x24   :  { %1696 = vmatpush3.bf16.msra.mxu0 %v1693_v59  ;;  %v1990_v59 = vld [vmem:[%s2540_s5 + $0x30] ss:$8 sps:$4 sm:$0xff]  }
  0x27   :  { %1632 = vmatmul.mubr.f32.vlgmr.msra.gmra.mrb[0].mxu0 %v88_v60  ;;  %v1993_v60 = vld [vmem:[%s2540_s5 + $0x110] ss:$8 sps:$4 sm:$0xff]  }
  0x28   :  { %1638 = vmatprep.mubr.msk.f32.mxu0 %vm196_vm0, %v178_v61  ;;  %v1994_v61 = vld [vmem:[%s2540_s5 + $0x84] ss:$8 sps:$4 sm:$0xff]  }
  0x86   :  { %v94_v0 = vpop.permute.xlu0 %93 }
  0x8a   :  { %v99_v1 = vpop.permute.xlu0 %98 }
  0xfa   :  { %v1633_v2 = vpop.f32.mrb[0].mxu0 }
  0xfb   :  { %v173_v3 = vadd.f32 %v1633_v2, %v99_v1  ;;  %v167_v4 = vpop.f32.mrb[1].mxu0  ;;  %v1996_v1 = vld [vmem:[%s2540_s5 + $0x80] ss:$8 sps:$4 sm:$0xff]  }
  0xfc   :  { %v168_v5 = vadd.f32 %v167_v4, %v94_v0  ;;  %v1999_v2 = vld [vmem:[%s2540_s5 + $0x120] ss:$8 sps:$4 sm:$0xff]  }
  0xfd   :  { %v177_v6 = vmax.f32 %v173_v3, 0.0  ;;  %v2000_v3 = vld [vmem:[%s2540_s5 + $0x94] ss:$8 sps:$4 sm:$0xff]  }
  0xfe   :  { %v176_v7 = vmax.f32 %v168_v5, 0.0  ;;  %v2003_v5 = vld [vmem:[%s2540_s5 + $0x134] ss:$8 sps:$4 sm:$0xff]  }
 0x100   :  { %v1697_v8 = vpack.c.bf16 %v177_v6, %v176_v7  ;;  %v2002_v7 = vld [vmem:[%s2540_s5 + $0x90] ss:$8 sps:$4 sm:$0xff]  }
 0x102   :  { %1698 = vmatprep.subr.bf16.mxu0 %v1697_v8 }
 0x103   :  { %1700 = vmatpush3.bf16.msra.mxu0 %v1697_v8  ;;  %v2005_v8 = vld [vmem:[%s2540_s5 + $0x130] ss:$8 sps:$4 sm:$0xff]  }
 0x104   :  { %1702 = vmatprep.subr.bf16.mxu0 %v1952_v9  ;;  %v2006_v9 = vld [vmem:[%s2540_s5 + $0xa4] ss:$8 sps:$4 sm:$0xff]  }
 0x106   :  { %1639 = vmatmul.mubr.msk.f32.vlgmr.msra.gmra.mrb[2].mxu0 %vm196_vm0, %v179_v10  ;;  %v2009_v10 = vld [vmem:[%s2540_s5 + $0x144] ss:$8 sps:$4 sm:$0xff]  }
 0x107   :  { %1641 = vmatprep.mubr.msk.f32.mxu0 %vm196_vm0, %v180_v12  ;;  %1704 = vmatpush1.bf16.msra.mxu0 %v1954_v11 }
 0x108   :  { %1706 = vmatprep.subr.bf16.mxu0 %v1955_v13  ;;  %v2008_v13 = vld [vmem:[%s2540_s5 + $0xa0] ss:$8 sps:$4 sm:$0xff]  }
 0x10a   :  { %1642 = vmatmul.mubr.msk.f32.gmra.mrb[4].mxu0 %vm196_vm0, %v181_v14  ;;  %v2011_v14 = vld [vmem:[%s2540_s5 + $0x140] ss:$8 sps:$4 sm:$0xff]  }
 0x10b   :  { %1644 = vmatprep.mubr.msk.f32.mxu0 %vm196_vm0, %v182_v16  ;;  %1708 = vmatpush1.bf16.msra.mxu0 %v1957_v15  ;;  %v2012_v15 = vld [vmem:[%s2540_s5 + $0xb4] ss:$8 sps:$4 sm:$0xff]  }
 0x10c   :  { %1710 = vmatprep.subr.bf16.mxu0 %v1958_v17  ;;  %v2015_v17 = vld [vmem:[%s2540_s5 + $0x154] ss:$8 sps:$4 sm:$0xff]  }
 0x10e   :  { %1645 = vmatmul.mubr.msk.f32.gmra.mrb[6].mxu0 %vm196_vm0, %v183_v18 }
 0x10f   :  { %1647 = vmatprep.mubr.msk.f32.mxu0 %vm196_vm0, %v184_v20  ;;  %1712 = vmatpush1.bf16.msra.mxu0 %v1960_v19  ;;  %v2014_v19 = vld [vmem:[%s2540_s5 + $0xb0] ss:$8 sps:$4 sm:$0xff]  }
 0x110   :  { %1714 = vmatprep.subr.bf16.mxu0 %v1964_v32  ;;  %v2017_v20 = vld [vmem:[%s2540_s5 + $0x150] ss:$8 sps:$4 sm:$0xff]   ;;  %v2032_v32 = vld [vmem:[%s2540_s5 + $0x1a0] ss:$8 sps:$4 sm:$0xff]  }
 0x112   :  { %1648 = vmatmul.mubr.msk.f32.gmra.mrb[8].mxu0 %vm196_vm0, %v185_v21  ;;  %v2018_v21 = vld [vmem:[%s2540_s5 + $0x164] ss:$8 sps:$4 sm:$0xff]  }
 0x113   :  { %1650 = vmatprep.mubr.msk.f32.mxu0 %vm196_vm0, %v186_v22  ;;  %1716 = vmatpush1.bf16.msra.mxu0 %v1966_v34  ;;  %v2035_v34 = vld [vmem:[%s2540_s5 + $0x1b0] ss:$8 sps:$4 sm:$0xff]  }
 0x114   :  { %1718 = vmatprep.subr.bf16.mxu0 %v1970_v36  ;;  %v2038_v36 = vld [vmem:[%s2540_s5 + $0x1c0] ss:$8 sps:$4 sm:$0xff]  }
 0x116   :  { %1651 = vmatmul.mubr.msk.f32.gmra.mrb[10].mxu0 %vm196_vm0, %v187_v23 }
 0x117   :  { %1653 = vmatprep.mubr.msk.f32.mxu0 %vm196_vm0, %v188_v24  ;;  %v2020_v24 = vld [vmem:[%s2540_s5 + $0x160] ss:$8 sps:$4 sm:$0xff]  }
 0x11a   :  { %1654 = vmatmul.mubr.msk.f32.gmra.mrb[12].mxu0 %vm196_vm0, %v189_v25  ;;  %v2021_v25 = vld [vmem:[%s2540_s5 + $0x174] ss:$8 sps:$4 sm:$0xff]  }
 0x11b   :  { %1656 = vmatprep.mubr.msk.f32.mxu0 %vm196_vm0, %v190_v26  ;;  %v2023_v26 = vld [vmem:[%s2540_s5 + $0x170] ss:$8 sps:$4 sm:$0xff]  }
 0x11e   :  { %1657 = vmatmul.mubr.msk.f32.gmra.mrb[14].mxu0 %vm196_vm0, %v191_v27  ;;  %v2024_v27 = vld [vmem:[%s2540_s5 + $0x184] ss:$8 sps:$4 sm:$0xff]  }
 0x11f   :  { %1659 = vmatprep.mubr.msk.f32.mxu0 %vm196_vm0, %v192_v28  ;;  %v2026_v28 = vld [vmem:[%s2540_s5 + $0x180] ss:$8 sps:$4 sm:$0xff]  }
 0x122   :  { %1660 = vmatmul.mubr.msk.f32.gmra.mrb[16].mxu0 %vm196_vm0, %v193_v29  ;;  %v2027_v29 = vld [vmem:[%s2540_s5 + $0x194] ss:$8 sps:$4 sm:$0xff]  }
 0x123   :  { %1662 = vmatprep.mubr.msk.f32.mxu0 %vm196_vm0, %v194_v30  ;;  %v2029_v30 = vld [vmem:[%s2540_s5 + $0x190] ss:$8 sps:$4 sm:$0xff]  }
 0x126   :  { %1663 = vmatmul.mubr.msk.f32.gmra.mrb[18].mxu0 %vm196_vm0, %v195_v31  ;;  %v2030_v31 = vld [vmem:[%s2540_s5 + $0x1a4] ss:$8 sps:$4 sm:$0xff]  }
 0x127   :  { %526 = vmatprep.mubr.f32.mxu0 %v2065_v38 }
 0x1d9   :  { %v1640_v43 = vpop.f32.mrb[2].mxu0 }
 0x1da   :  { %v317_v44 = vpop.f32.mrb[3].mxu0 }
 0x1dd   :  { %v1643_v46 = vpop.f32.mrb[4].mxu0 }
 0x1de   :  { %v327_v48 = vpop.f32.mrb[5].mxu0 }
 0x1df   :  { %1487 = vmatmul.mubr.msk.f32.vlgmr.msra.gmra.mrb[20].mxu0 %vm455_vm1, %v327_v48  ;;  %v2054_v48 = vld [vmem:[%s2540_s5 + $0x224] ss:$8 sps:$4 sm:$0xff]  }
 0x1e0   :  { %1720 = vmatpush1.bf16.msra.mxu0 %v1972_v45  ;;  %532 = vmatprep.mubr.f32.mxu0 %v2065_v38  ;;  %v2050_v45 = vld [vmem:[%s2540_s5 + $0x200] ss:$8 sps:$4 sm:$0xff]  }
 0x1e1   :  { %v2303_v50 = vpop.f32.mrb[6].mxu0  ;;  %1722 = vmatprep.subr.bf16.mxu0 %v1976_v47  ;;  %v2053_v47 = vld [vmem:[%s2540_s5 + $0x210] ss:$8 sps:$4 sm:$0xff]  }
 0x1e2   :  { %v2308_v52 = vpop.f32.mrb[7].mxu0 }
 0x1e3   :  { %1488 = vmatmul.mubr.msk.f32.gmra.mrb[22].mxu0 %vm455_vm1, %v1643_v46  ;;  %v2051_v46 = vld [vmem:[%s2540_s5 + $0x214] ss:$8 sps:$4 sm:$0xff]  }
 0x1e4   :  { %1724 = vmatpush1.bf16.msra.mxu0 %v1978_v49  ;;  %609 = vmatprep.mubr.f32.mxu0 %v2065_v38  ;;  %v2056_v49 = vld [vmem:[%s2540_s5 + $0x220] ss:$8 sps:$4 sm:$0xff]  }
 0x1e5   :  { %v1649_v55 = vpop.f32.mrb[8].mxu0  ;;  %1726 = vmatprep.subr.bf16.mxu0 %v1982_v51  ;;  %v2059_v51 = vld [vmem:[%s2540_s5 + $0x230] ss:$8 sps:$4 sm:$0xff]  }
 0x1e6   :  { %v347_v57 = vpop.f32.mrb[9].mxu0 }
 0x1e7   :  { %1509 = vmatmul.mubr.msk.f32.vlgmr.msra.gmra.mrb[0].mxu1 %vm455_vm1, %v347_v57 }
 0x1e8   :  { %1728 = vmatpush1.bf16.msra.mxu0 %v1984_v53  ;;  %1768 = vmatpush1.bf16.msra.mxu1 %v1987_v54 }
 0x1e9   :  { %1730 = vmatprep.subr.bf16.mxu0 %v1988_v56  ;;  %835 = vmatprep.mubr.f32.mxu1 %v2065_v38  ;;  %v1652_v63 = vpop.f32.mrb[10].mxu0 }
 0x1ea   :  { %1770 = vmatprep.subr.bf16.mxu1 %v1991_v58  ;;  %v357_v0 = vpop.f32.mrb[11].mxu0 }
 0x1eb   :  { %1510 = vmatmul.mubr.msk.f32.gmra.mrb[2].mxu1 %vm455_vm1, %v1649_v55 }
 0x1ec   :  { %1732 = vmatpush1.bf16.msra.mxu0 %v1990_v59  ;;  %1772 = vmatpush1.bf16.msra.mxu1 %v1993_v60 }
 0x1ed   :  { %1734 = vmatprep.subr.bf16.mxu0 %v1994_v61  ;;  %1774 = vmatprep.subr.bf16.mxu1 %v1997_v62  ;;  %v2348_v4 = vpop.f32.mrb[12].mxu0 }
 0x1ee   :  { %941 = vmatprep.mubr.f32.mxu1 %v2065_v38  ;;  %v367_v6 = vpop.f32.mrb[13].mxu0 }
 0x1ef   :  { %1489 = vmatmul.mubr.msk.f32.vlgmr.msra.gmra.mrb[20].mxu0 %vm455_vm1, %v317_v44  ;;  %v2048_v44 = vld [vmem:[%s2540_s5 + $0x204] ss:$8 sps:$4 sm:$0xff]  }
 0x1f0   :  { %1736 = vmatpush1.bf16.msra.mxu0 %v1996_v1  ;;  %1776 = vmatpush1.bf16.msra.mxu1 %v1999_v2 }
 0x1f1   :  { %615 = vmatprep.mubr.f32.mxu0 %v2065_v38  ;;  %1738 = vmatprep.subr.bf16.mxu0 %v2000_v3  ;;  %v2368_v11 = vpop.f32.mrb[14].mxu0 }
 0x1f2   :  { %1778 = vmatprep.subr.bf16.mxu1 %v2003_v5  ;;  %v377_v12 = vpop.f32.mrb[15].mxu0 }
 0x1f3   :  { %1490 = vmatmul.mubr.msk.f32.gmra.mrb[22].mxu0 %vm455_vm1, %v1640_v43  ;;  %v2047_v43 = vld [vmem:[%s2540_s5 + $0x1f0] ss:$8 sps:$4 sm:$0xff]  }
 0x1f4   :  { %1740 = vmatpush1.bf16.msra.mxu0 %v2002_v7  ;;  %1780 = vmatpush1.bf16.msra.mxu1 %v2005_v8 }
 0x1f5   :  { %1742 = vmatprep.subr.bf16.mxu0 %v2006_v9  ;;  %1782 = vmatprep.subr.bf16.mxu1 %v2009_v10  ;;  %v2380_v16 = vpop.f32.mrb[16].mxu0 }
 0x1f6   :  { %717 = vmatprep.mubr.f32.mxu0 %v2065_v38  ;;  %v2386_v18 = vpop.f32.mrb[17].mxu0 }
 0x1f7   :  { %1519 = vmatmul.mubr.msk.f32.vlgmr.msra.gmra.mrb[0].mxu1 %vm455_vm1, %v357_v0 }
 0x1f8   :  { %1744 = vmatpush1.bf16.msra.mxu0 %v2008_v13  ;;  %1784 = vmatpush1.bf16.msra.mxu1 %v2011_v14 }
 0x1f9   :  { %947 = vmatprep.mubr.f32.mxu1 %v2065_v38  ;;  %1746 = vmatprep.subr.bf16.mxu0 %v2012_v15  ;;  %v2399_v22 = vpop.f32.mrb[18].mxu0 }
 0x1fa   :  { %1786 = vmatprep.subr.bf16.mxu1 %v2015_v17  ;;  %v2401_v23 = vpop.f32.mrb[19].mxu0 }
 0x1fb   :  { %1520 = vmatmul.mubr.msk.f32.gmra.mrb[2].mxu1 %vm455_vm1, %v1652_v63 }
 0x1fc   :  { %1748 = vmatpush1.bf16.msra.mxu0 %v2014_v19  ;;  %1788 = vmatpush1.bf16.msra.mxu1 %v2017_v20 }
 0x1fd   :  { %1790 = vmatprep.subr.bf16.mxu1 %v2018_v21  ;;  %1053 = vmatprep.mubr.f32.mxu1 %v2065_v38 }
 0x1ff   :  { %1499 = vmatmul.mubr.msk.f32.vlgmr.msra.gmra.mrb[20].mxu0 %vm455_vm1, %v2308_v52 }
 0x200   :  { %1792 = vmatpush1.bf16.msra.mxu1 %v2020_v24  ;;  %723 = vmatprep.mubr.f32.mxu0 %v2065_v38 }
 0x201   :  { %1794 = vmatprep.subr.bf16.mxu1 %v2021_v25 }
 0x203   :  { %1500 = vmatmul.mubr.msk.f32.gmra.mrb[22].mxu0 %vm455_vm1, %v2303_v50  ;;  %v2057_v50 = vld [vmem:[%s2540_s5 + $0x234] ss:$8 sps:$4 sm:$0xff]  }
 0x204   :  { %1796 = vmatpush1.bf16.msra.mxu1 %v2023_v26  ;;  %v1445_v26 = vld [vmem:[%s2541_s0] sm:$0xff] }
 0x205   :  { %1798 = vmatprep.subr.bf16.mxu1 %v2024_v27  ;;  %v1446_v27 = vld [vmem:[%s2541_s0 + $0x8] sm:$0xff] }
 0x207   :  { %1529 = vmatmul.mubr.msk.f32.vlgmr.msra.gmra.mrb[0].mxu1 %vm455_vm1, %v367_v6 }
 0x208   :  { %1800 = vmatpush1.bf16.msra.mxu1 %v2026_v28  ;;  %1059 = vmatprep.mubr.f32.mxu1 %v2065_v38 }
 0x209   :  { %1802 = vmatprep.subr.bf16.mxu1 %v2027_v29 }
 0x20b   :  { %1530 = vmatmul.mubr.msk.f32.gmra.mrb[2].mxu1 %vm455_vm1, %v2348_v4 }
 0x20c   :  { %1804 = vmatpush1.bf16.msra.mxu1 %v2029_v30  ;;  %1165 = vmatprep.mubr.f32.mxu1 %v2065_v38 }
 0x20d   :  { %1806 = vmatprep.subr.bf16.mxu1 %v2030_v31 }
 0x210   :  { %1808 = vmatpush1.bf16.msra.mxu1 %v2032_v32 }
 0x211   :  { %1810 = vmatprep.subr.bf16.mxu1 %v2033_v33 }
 0x214   :  { %1812 = vmatpush1.bf16.msra.mxu1 %v2035_v34 }
 0x215   :  { %1814 = vmatprep.subr.bf16.mxu1 %v2036_v35  ;;  %v1447_v35 = vld [vmem:[%s2541_s0 + $0x10] sm:$0xff] }
 0x217   :  { %1539 = vmatmul.mubr.msk.f32.vlgmr.msra.gmra.mrb[0].mxu1 %vm455_vm1, %v377_v12 }
 0x218   :  { %1816 = vmatpush1.bf16.msra.mxu1 %v2038_v36  ;;  %1171 = vmatprep.mubr.f32.mxu1 %v2065_v38  ;;  %v1448_v36 = vld [vmem:[%s2541_s0 + $0x18] sm:$0xff] }
 0x219   :  { %1818 = vmatprep.subr.bf16.mxu1 %v2039_v37 }
 0x21b   :  { %1540 = vmatmul.mubr.msk.f32.gmra.mrb[2].mxu1 %vm455_vm1, %v2368_v11 }
 0x21c   :  { %1820 = vmatpush1.bf16.msra.mxu1 %v2041_v39  ;;  %1277 = vmatprep.mubr.f32.mxu1 %v2065_v38 }
 0x21d   :  { %1822 = vmatprep.subr.bf16.mxu1 %v2042_v40 }
 0x220   :  { %1824 = vmatpush1.bf16.msra.mxu1 %v2044_v41 }
 0x221   :  { %1826 = vmatprep.subr.bf16.mxu1 %v2045_v42 }
 0x224   :  { %1828 = vmatpush1.bf16.msra.mxu1 %v2047_v43 }
 0x225   :  { %1830 = vmatprep.subr.bf16.mxu1 %v2048_v44 }
 0x227   :  { %1549 = vmatmul.mubr.msk.f32.vlgmr.msra.gmra.mrb[0].mxu1 %vm455_vm1, %v2386_v18 }
 0x228   :  { %1832 = vmatpush1.bf16.msra.mxu1 %v2050_v45  ;;  %1283 = vmatprep.mubr.f32.mxu1 %v2065_v38 }
 0x229   :  { %1834 = vmatprep.subr.bf16.mxu1 %v2051_v46 }
 0x22b   :  { %1550 = vmatmul.mubr.msk.f32.gmra.mrb[2].mxu1 %vm455_vm1, %v2380_v16 }
 0x22c   :  { %1836 = vmatpush1.bf16.msra.mxu1 %v2053_v47  ;;  %1389 = vmatprep.mubr.f32.mxu1 %v2065_v38 }
 0x22d   :  { %1838 = vmatprep.subr.bf16.mxu1 %v2054_v48 }
 0x230   :  { %1840 = vmatpush1.bf16.msra.mxu1 %v2056_v49 }
 0x231   :  { %1842 = vmatprep.subr.bf16.mxu1 %v2057_v50 }
 0x234   :  { %1844 = vmatpush1.bf16.msra.mxu1 %v2059_v51 }
 0x237   :  { %1559 = vmatmul.mubr.msk.f32.vlgmr.msra.gmra.mrb[0].mxu1 %vm455_vm1, %v2401_v23 }
 0x238   :  { %1395 = vmatprep.mubr.f32.mxu1 %v2065_v38 }
 0x23b   :  { %1560 = vmatmul.mubr.msk.f32.gmra.mrb[2].mxu1 %vm455_vm1, %v2399_v22 }
 0x2d2   :  { %v719_v52 = vpop.f32.mrb[20].mxu0 }
 0x2d3   :  { %v721_v53 = vpop.f32.mrb[21].mxu0 }
 0x2d6   :  { %v725_v54 = vpop.f32.mrb[22].mxu0 }
 0x2d7   :  { %v727_v55 = vpop.f32.mrb[23].mxu0 }
 0x30a   :  { %v1391_v56 = vpop.f32.mrb[0].mxu1 }
 0x30b   :  { %v1845_v57 = vadd.f32 %v1391_v56, %v719_v52  ;;  %v1393_v58 = vpop.f32.mrb[1].mxu1 }
 0x30c   :  { %v1846_v59 = vadd.f32 %v1393_v58, %v721_v53 }
 0x30d   :  { %v1415_v60 = vmul.f32 %v1845_v57, %v1845_v57 }
 0x30e   :  { %v1397_v61 = vpop.f32.mrb[2].mxu1  ;;  %v1406_v62 = vadd.f32 %v1846_v59, %v1845_v57  ;;  %v1416_v63 = vmul.f32 %v1846_v59, %v1846_v59 }
 0x30f   :  { %v1847_v0 = vadd.f32 %v1397_v61, %v725_v54  ;;  %v1399_v1 = vpop.f32.mrb[3].mxu1 }
 0x310   :  { %v1848_v2 = vadd.f32 %v1399_v1, %v727_v55  ;;  %1407 = vadd.xlane.f32.xlu1 %v1406_v62  ;;  %v1419_v38 = vadd.f32 %v1416_v63, %v1415_v60 }
 0x311   :  { %v1417_v4 = vmul.f32 %v1847_v0, %v1847_v0 }
 0x312   :  { %1420 = vadd.xlane.f32.xlu0 %v1419_v38  ;;  %v1409_v3 = vadd.f32 %v1848_v2, %v1847_v0  ;;  %v1418_v5 = vmul.f32 %v1848_v2, %v1848_v2 }
 0x314   :  { %1410 = vadd.xlane.f32.xlu1 %v1409_v3  ;;  %v1422_v6 = vadd.f32 %v1418_v5, %v1417_v4 }
 0x318   :  { %1423 = vadd.xlane.f32.xlu1 %v1422_v6 }
 0x39d   :  { %v1408_v7 = vpop.xlane.xlu1 %1407 }
 0x39e   :  { %v1413_v8 = vmul.f32 0.00390625, %v1408_v7 }
 0x39f   :  { %v1421_v9 = vpop.xlane.xlu0 %1420 }
 0x3a0   :  { %v1425_v10 = vmul.f32 0.00390625, %v1421_v9  ;;  %v1427_v11 = vmul.f32 %v1413_v8, %v1413_v8  ;;  %v1433_v23 = vsub.f32 %v1845_v57, %v1413_v8  ;;  %v1434_v24 = vsub.f32 %v1846_v59, %v1413_v8 }
 0x3a1   :  { %v1411_v12 = vpop.xlane.xlu1 %1410 }
 0x3a2   :  { %v1429_v13 = vsub.f32 %v1425_v10, %v1427_v11  ;;  %v1414_v14 = vmul.f32 0.00390625, %v1411_v12 }
 0x3a4   :  { %v1431_v15 = vmax.f32 %v1429_v13, 0.0  ;;  %v1428_v18 = vmul.f32 %v1414_v14, %v1414_v14  ;;  %v1435_v32 = vsub.f32 %v1847_v0, %v1414_v14  ;;  %v1436_v33 = vsub.f32 %v1848_v2, %v1414_v14 }
 0x3a5   :  { %v1424_v16 = vpop.xlane.xlu1 %1423 }
 0x3a6   :  { %v1437_v17 = vadd.f32 1e-05, %v1431_v15  ;;  %v1426_v19 = vmul.f32 0.00390625, %v1424_v16 }
 0x3a8   :  { %2060 = vrsqrt.f32 %v1437_v17  ;;  %v1430_v20 = vsub.f32 %v1426_v19, %v1428_v18 }
 0x3aa   :  { %v1432_v21 = vmax.f32 %v1430_v20, 0.0 }
 0x3ac   :  { %v1438_v22 = vadd.f32 1e-05, %v1432_v21 }
 0x3ae   :  { %2062 = vrsqrt.f32 %v1438_v22 }
 0x3b2   :  { %v2061_v25 = vpop.eup %2060 }
 0x3b3   :  { %v1441_v28 = vmul.f32 %v2061_v25, %v1433_v23  ;;  %v1442_v29 = vmul.f32 %v2061_v25, %v1434_v24 }
 0x3b5   :  { %v1449_v30 = vadd.f32 %v1445_v26, %v1441_v28  ;;  %v1450_v31 = vadd.f32 %v1446_v27, %v1442_v29 }
 0x3b7   :  { %1453 = vst [vmem:[%s2542_s6] sm:$0xff] %v1449_v30  ;;  %1454 = vst [vmem:[%s2542_s6 + $0x8] sm:$0xff] %v1450_v31 }
 0x3b8   :  { %v2063_v34 = vpop.eup %2062 }
 0x3b9   :  { %v1443_v37 = vmul.f32 %v2063_v34, %v1435_v32  ;;  %v1444_v39 = vmul.f32 %v2063_v34, %v1436_v33 }
 0x3bb   :  { %v1451_v40 = vadd.f32 %v1447_v35, %v1443_v37  ;;  %v1452_v41 = vadd.f32 %v1448_v36, %v1444_v39 }
 0x3bd   :  { %1455 = vst [vmem:[%s2542_s6 + $0x10] sm:$0xff] %v1451_v40  ;;  %1456 = vst [vmem:[%s2542_s6 + $0x18] sm:$0xff] %v1452_v41 }

</bundles_post_ra>
